<compile_context>
chip_gen: v7x
topology: tpu7x:2x2x1
jax: 0.10.0
libtpu: 0.0.40
codegen_flags: <defaults>
</compile_context>

<pallas_src>
import jax
import jax.numpy as jnp
from jax.experimental import pallas as pl
from jax.experimental.pallas import tpu as pltpu

EPS = 0.001               # module's self.epsilon
LANES = 128               # vreg lane width
SUBLANES = 8              # vreg sublane count (f32)
TARGET_TILE_ROWS = 2048   # 2048 * 128 * 4 B = 1 MiB per input block
NCORES = 2                # leading "parallel" grid axis (v7x megacore)


def _charbonnier_kernel(x_ref, y_ref, o_ref):
    i = pl.program_id(1)

    @pl.when(i == 0)
    def _():
        o_ref[...] = jnp.zeros_like(o_ref)

    x = x_ref[...].astype(jnp.float32)
    y = y_ref[...].astype(jnp.float32)
    d = x - y
    val = jnp.sqrt(d * d + jnp.float32(EPS * EPS))

    # Lane-wise partial sum: (tile_rows, 128) -> (tile_rows//8, 8, 128) -> (1, 8, 128).
    # Pure VPU adds; no cross-lane (XLU) reduction in the hot loop.
    o_ref[...] += val.reshape(-1, SUBLANES, LANES).sum(axis=0, keepdims=True)


def l1_charbonnier_loss(X, Y):
    assert X.shape == Y.shape, "X and Y must have the same shape"
    n_valid = int(X.size)

    xf = jnp.ravel(X)
    yf = jnp.ravel(Y)

    # Choose a tile size: as large as TARGET_TILE_ROWS, but no larger than the
    # (8-aligned) per-core share for small inputs.
    n_rows_raw = pl.cdiv(n_valid, LANES)
    rows_per_core = pl.cdiv(n_rows_raw, NCORES)
    tile_rows = max(SUBLANES, min(TARGET_TILE_ROWS,
                                  pl.cdiv(rows_per_core, SUBLANES) * SUBLANES))
    steps_per_core = pl.cdiv(n_rows_raw, NCORES * tile_rows)
    n_rows = NCORES * steps_per_core * tile_rows
    n_pad = n_rows * LANES - n_valid

    # Fast path: skip the padding copy when the flat size already fits the grid.
    if n_pad:
        xf = jnp.pad(xf, (0, n_pad))
        yf = jnp.pad(yf, (0, n_pad))
    x2d = xf.reshape(n_rows, LANES)
    y2d = yf.reshape(n_rows, LANES)

    in_map = lambda c, i: (c * steps_per_core + i, 0)

    partials = pl.pallas_call(
        _charbonnier_kernel,
        out_shape=jax.ShapeDtypeStruct((NCORES, SUBLANES, LANES), jnp.float32),
        grid_spec=pltpu.PrefetchScalarGridSpec(
            num_scalar_prefetch=0,
            grid=(NCORES, steps_per_core),
            in_specs=[
                pl.BlockSpec((tile_rows, LANES), in_map),
                pl.BlockSpec((tile_rows, LANES), in_map),
            ],
            out_specs=pl.BlockSpec((1, SUBLANES, LANES), lambda c, i: (c, 0, 0)),
        ),
        compiler_params=pltpu.CompilerParams(
            dimension_semantics=("parallel", "arbitrary")),
    )(x2d, y2d)

    # Finalize in plain JAX (tiny): cross-lane reduce of 2*8*128 partials,
    # subtract the analytic contribution of the zero-padded elements, divide.
    pad_term = jnp.float32(n_pad) * jnp.sqrt(jnp.float32(EPS * EPS))
    return (jnp.sum(partials) - pad_term) / jnp.float32(n_valid)


if __name__ == "__main__":
    key = jax.random.PRNGKey(0)
    kx, ky = jax.random.split(key)
    # NCHW, small shapes consistent with an image loss
    X = jax.random.normal(kx, (2, 4, 16, 16), dtype=jnp.float32)
    Y = jax.random.normal(ky, (2, 4, 16, 16), dtype=jnp.float32)

    loss = l1_charbonnier_loss(X, Y)
    jax.block_until_ready(loss)

    # Reference check (plain JAX)
    ref = jnp.mean(jnp.sqrt((X - Y) ** 2 + EPS ** 2))
    assert jnp.allclose(loss, ref, rtol=1e-5, atol=1e-6), (loss, ref)

    print("KERNEL_OK")
</pallas_src>

<mosaic_0001>
module attributes {stable_mosaic.version = 11 : i64} {
  func.func @_charbonnier_kernel(%arg0: i32, %arg1: i32, %arg2: memref<8x128xf32, #tpu.memory_space<vmem>>, %arg3: memref<8x128xf32, #tpu.memory_space<vmem>>, %arg4: memref<1x8x128xf32, #tpu.memory_space<vmem>>) attributes {dimension_semantics = [#tpu.dimension_semantics<parallel>, #tpu.dimension_semantics<arbitrary>], iteration_bounds = array<i64: 2, 1>, scalar_prefetch = 0 : i64, scratch_operands = 0 : i64, tpu.core_type = #tpu.core_type<tc>, window_params = [{transform_indices = @transform_0, window_bounds = array<i64: 8, 128>}, {transform_indices = @transform_1, window_bounds = array<i64: 8, 128>}, {transform_indices = @transform_2, window_bounds = array<i64: 1, 8, 128>}]} {
    %c0_i32 = arith.constant 0 : i32
    %0 = arith.cmpi eq, %arg1, %c0_i32 : i32
    %1 = arith.extui %0 : i1 to i32
    %c0_i32_0 = arith.constant 0 : i32
    %2 = arith.cmpi ne, %1, %c0_i32_0 : i32
    scf.if %2 {
      %cst_11 = arith.constant 0.000000e+00 : f32
      %16 = vector.broadcast %cst_11 : f32 to vector<1x8x128xf32>
      %c0_12 = arith.constant 0 : index
      %c0_13 = arith.constant 0 : index
      %c0_14 = arith.constant 0 : index
      %17 = vector.load %arg4[%c0_12, %c0_13, %c0_14] : memref<1x8x128xf32, #tpu.memory_space<vmem>>, vector<1x8x128xf32>
      tpu.vector_store %arg4[%c0_12, %c0_13, %c0_14], %16 {strides = array<i32>} : memref<1x8x128xf32, #tpu.memory_space<vmem>>, vector<1x8x128xf32>,
    } else {
    }
    %c0 = arith.constant 0 : index
    %c0_1 = arith.constant 0 : index
    %3 = vector.load %arg2[%c0, %c0_1] : memref<8x128xf32, #tpu.memory_space<vmem>>, vector<8x128xf32>
    %c0_2 = arith.constant 0 : index
    %c0_3 = arith.constant 0 : index
    %4 = vector.load %arg3[%c0_2, %c0_3] : memref<8x128xf32, #tpu.memory_space<vmem>>, vector<8x128xf32>
    %5 = arith.subf %3, %4 : vector<8x128xf32>
    %6 = arith.mulf %5, %5 : vector<8x128xf32>
    %cst = arith.constant 9.99999997E-7 : f32
    %7 = vector.broadcast %cst : f32 to vector<8x128xf32>
    %8 = arith.addf %6, %7 : vector<8x128xf32>
    %9 = math.sqrt %8 : vector<8x128xf32>
    %c0_4 = arith.constant 0 : index
    %c0_5 = arith.constant 0 : index
    %c0_6 = arith.constant 0 : index
    %10 = vector.load %arg4[%c0_4, %c0_5, %c0_6] : memref<1x8x128xf32, #tpu.memory_space<vmem>>, vector<1x8x128xf32>
    %11 = vector.shape_cast %9 : vector<8x128xf32> to vector<1x8x128xf32>
    %cst_7 = arith.constant dense<0.000000e+00> : vector<8x128xf32>
    %12 = vector.multi_reduction <add>, %11, %cst_7 [0] : vector<1x8x128xf32> to vector<8x128xf32>
    %13 = vector.shape_cast %12 : vector<8x128xf32> to vector<1x8x128xf32>
    %14 = arith.addf %10, %13 : vector<1x8x128xf32>
    %c0_8 = arith.constant 0 : index
    %c0_9 = arith.constant 0 : index
    %c0_10 = arith.constant 0 : index
    %15 = vector.load %arg4[%c0_8, %c0_9, %c0_10] : memref<1x8x128xf32, #tpu.memory_space<vmem>>, vector<1x8x128xf32>
    tpu.vector_store %arg4[%c0_8, %c0_9, %c0_10], %14 {strides = array<i32>} : memref<1x8x128xf32, #tpu.memory_space<vmem>>, vector<1x8x128xf32>,
    return
  }
  func.func @transform_0(%arg0: i32, %arg1: i32) -> (i32, i32) {
    %c1_i32 = arith.constant 1 : i32
    %0 = arith.muli %arg0, %c1_i32 : i32
    %1 = arith.addi %0, %arg1 : i32
    %c0_i32 = arith.constant 0 : i32
    %c0_i32_0 = arith.constant 0 : i32
    return %1, %c0_i32 : i32, i32
  }
  func.func @transform_1(%arg0: i32, %arg1: i32) -> (i32, i32) {
    %c1_i32 = arith.constant 1 : i32
    %0 = arith.muli %arg0, %c1_i32 : i32
    %1 = arith.addi %0, %arg1 : i32
    %c0_i32 = arith.constant 0 : i32
    %c0_i32_0 = arith.constant 0 : i32
    return %1, %c0_i32 : i32, i32
  }
  func.func @transform_2(%arg0: i32, %arg1: i32) -> (i32, i32, i32) {
    %c0_i32 = arith.constant 0 : i32
    %c0_i32_0 = arith.constant 0 : i32
    %c0_i32_1 = arith.constant 0 : i32
    return %arg0, %c0_i32, %c0_i32_0 : i32, i32, i32
  }
}

</mosaic_0001>

<bundles_post_ra>
// kernel: tpu_custom_call.1
= control target key start
LH: loop header
LB: loop body
LE: loop exit
PB: predicated region body
PF: predicated region fallthrough
CT: control target
= control target key end

     0   :  { %7 = vsyncpa [#allocation3], 0  ;;  %s826_s0 = inlined_call_operand.hbm [shape: f32[16,128], index: 0, kind: input, shape index: {}]   ;;  %s827_s1 = inlined_call_operand.hbm [shape: f32[16,128], index: 1, kind: input, shape index: {}]   ;;  %s828_s2 = inlined_call_operand.hbm [shape: f32[2,8,128], index: 2, kind: output, shape index: {}]  }
   0x1   :  { %9 = vsyncpa [#allocation3 + $0x1], 0 }
   0x2   :  { %10 = vsyncpa [#allocation6], 0 }
   0x3   :  { %12 = vsyncpa [#allocation6 + $0x1], 0 }
   0x4   :  { %13 = vsyncpa [#allocation4], 0 }
   0x5   :  { %15 = vsyncpa [#allocation4 + $0x1], 0  ;;  %s606_s9 = smov 0   ;;  %s608_s10 = smov 0  }
   0x6   :  { %s610_s11 = smov 0   ;;  %s612_s12 = smov 0  }
   0x7   :  { %s614_s13 = smov 0   ;;  %s616_s14 = smov 0  }
   0x8 LB: > { %s354_s15 = sadd.s32 4294967295, %s586_s14   ;;  %s355_s16 = sadd.s32 4294967294, %s586_s14   ;;  %s586_s14 = sphi %s616_s14, %s21_s14   ;;  %s582_s13 = sphi %s614_s13, %s848_s13   ;;  %s578_s12 = sphi %s612_s12, %s847_s12   ;;  %s574_s11 = sphi %s610_s11, %s846_s11   ;;  %s570_s10 = sphi %s608_s10, %s845_s10   ;;  %s566_s9 = sphi %s606_s9, %s844_s9  }
   0x9   : > { %s33_s17 = sadd.s32 1, %s582_s13  ;;  %s42_s18 = sadd.s32 1, %s574_s11 }
   0xa   : > { %p35_p0 = scmp.ge.s32.totalorder %s33_s17, 2  ;;  %p49_p1 = scmp.ne.s32.totalorder %s574_s11, %s570_s10 }
   0xb   : > { %p50_p2 = scmp.eq.s32.totalorder %s586_s14, 0  ;;  %p55_p3 = scmp.ne.s32.totalorder %s570_s10, %s566_s9 }
   0xc   : > { %s850_s17 = smov (%p35_p0, %s33_s17), 0  ;;  %p56_p5 = scmp.eq.s32.totalorder %s354_s15, 0 }
   0xd   : > { %p647_p4 = por %p50_p2, %p49_p1  ;;  %s39_s20 = ssub.s32 %s582_s13, %s850_s17 }
   0xe   : > { %p107_p6 = scmp.eq.s32.totalorder %s354_s15, 1  ;;  %p40_p7 = scmp.eq.s32.totalorder %s39_s20, 0 }
   0xf   : > { %p653_p8 = por %p56_p5, %p55_p3  ;;  %p113_p10 = scmp.eq.s32.totalorder %s355_s16, 1 }
  0x10   : > { %p657_p9 = por %p107_p6, %p49_p1  ;;  %p387_p13 = scmp.lt.s32.totalorder %s586_s14, 2 }
  0x11   : > { %s832_s21 = scalar_select %p653_p8, 1, 0 }
  0x12   : > { %s833_s22 = scalar_select %p657_p9, 1, 0 }
  0x13   : > { %s662_s23 = scalar_select %p40_p7, %s574_s11, %s42_s18  }
  0x14   : > { %p664_p11 = por %p113_p10, %p55_p3  ;;  %s671_s25 = sand.u32 1, %s574_s11  }
  0x15   : > { %s358_s26 = sshll.u32 %s671_s25, 3  ;;  %s359_s27 = sshll.u32 %s582_s13, 7 }
  0x16   : > { %s834_s24 = scalar_select %p664_p11, 1, 0 }
  0x17   : > { %s680_s30 = scalar_lea.hbm %s826_s0, %s359_s27  ;;  %s137_s3 = scalar_lea.vmem [#allocation2], %s358_s26 }
  0x18   : > { %s145_s4 = sshll.u32 %s137_s3, 4  ;;  %p688_p0 = pnand %p387_p13, %p647_p4  ;;  %s684_s4 = int_to_ptr.vmem [resolvable:$true] %s145_s4 }
  0x19   : > { %s134_s6 = scalar_lea.sflag [#allocation3], %s671_s25  ;;  %s440_s7 = scalar_lea.hbm %s680_s30, 128 }
  0x1a   : > { %p441_p3 = scmp.ne.s32.totalorder %s680_s30, %s440_s7  ;;  %p442_p5 = pneg %p688_p0 }
  0x1b   : > { %s445_s16 = scalar_lea.hbm %s826_s0, 256  ;;  %p446_p4 = scmp.lt.u32.totalorder %s680_s30, %s826_s0 }
  0x1c   : > { %p443_p6 = pnand %p442_p5, %p441_p3  ;;  %p447_p10 = scmp.lt.u32.totalorder %s445_s16, %s440_s7 }
  0x1d   : > { %p449_p12 = scmp.lt.u32.totalorder %s440_s7, %s680_s30 }
  0x1e   : > { %p444_p7 = pneg %p443_p6  ;;  %p448_p13 = por %p447_p10, %p446_p4 }
  0x20   : > { %p450_p1 = por %p449_p12, %p448_p13 }
  0x22   : > { %p451_p2 = pnand %p450_p1, %p444_p7 }
  0x24   : > { %454 = shalt.err (!%p451_p2)
}
  0x25   : > { %s455_s20 = scalar_lea.vmem %s684_s4, 128  ;;  %s588_s28 = smov [#allocation2]  }
  0x26   : > { %p456_p3 = scmp.ne.s32.totalorder %s684_s4, %s455_s20  ;;  %s460_s29 = sshll.u32 %s588_s28, 4  ;;  %s461_s29 = int_to_ptr.vmem [resolvable:$false] %s460_s29 }
  0x27   : > { %s462_s3 = scalar_lea.vmem %s461_s29, 256  ;;  %p463_p9 = scmp.lt.s32.totalorder %s684_s4, %s461_s29 }
  0x28   : > { %p458_p6 = pnand %p456_p3, %p442_p5  ;;  %p464_p4 = scmp.lt.s32.totalorder %s462_s3, %s455_s20 }
  0x2a   : > { %p459_p11 = pneg %p458_p6  ;;  %p465_p10 = por %p464_p4, %p463_p9 }
  0x2c   : > { %p466_p12 = pnand %p465_p10, %p459_p11 }
  0x2e   : > { %469 = shalt.err (!%p466_p12)
}
  0x2f   : > { %379 = dma.hbm_to_vmem [thread:$0]  (!%p688_p0), %s680_s30, 128, %s684_s4, %s134_s6  }
  0x30   : > { %p836_p1 = scmp.lt.s32.totalorder %s586_s14, 3  ;;  %p837_p2 = scmp.ge.s32.totalorder %s586_s14, 1 }
  0x31   : > { %s733_s16 = scalar_lea.hbm %s827_s1, %s359_s27  ;;  %s156_s18 = scalar_lea.vmem [#allocation5], %s358_s26 }
  0x32   : > { %p724_p7 = pnand %p837_p2, %p836_p1  ;;  %s164_s19 = sshll.u32 %s156_s18, 4  ;;  %s165_s19 = int_to_ptr.vmem [resolvable:$true] %s164_s19 }
  0x33   : > { %s153_s30 = scalar_lea.sflag [#allocation6], %s671_s25  ;;  %s470_s4 = scalar_lea.hbm %s733_s16, 128 }
  0x34   : > { %s838_s7 = scalar_select %p724_p7, 1, 0 }
  0x35   : > { %p471_p9 = scmp.ne.s32.totalorder %s733_s16, %s470_s4  ;;  %s475_s27 = scalar_lea.hbm %s827_s1, 256 }
  0x36   : > { %p476_p3 = scmp.lt.u32.totalorder %s733_s16, %s827_s1  ;;  %p477_p6 = scmp.lt.u32.totalorder %s475_s27, %s470_s4 }
  0x37   : > { %p473_p11 = pnand %p471_p9, %p442_p5  ;;  %p479_p10 = scmp.lt.u32.totalorder %s470_s4, %s733_s16 }
  0x38   : > { %p478_p4 = por %p477_p6, %p476_p3 }
  0x39   : > { %p474_p13 = pneg %p473_p11 }
  0x3a   : > { %p480_p12 = por %p479_p10, %p478_p4 }
  0x3c   : > { %p481_p1 = pnand %p480_p12, %p474_p13 }
  0x3e   : > { %484 = shalt.err (!%p481_p1)
}
  0x3f   : > { %s485_s25 = scalar_lea.vmem %s165_s19, 128  ;;  %s589_s26 = smov [#allocation5]  }
  0x40   : > { %p486_p2 = scmp.ne.s32.totalorder %s165_s19, %s485_s25  ;;  %s490_s3 = sshll.u32 %s589_s26, 4  ;;  %s491_s3 = int_to_ptr.vmem [resolvable:$false] %s490_s3 }
  0x41   : > { %s492_s8 = scalar_lea.vmem %s491_s3, 256  ;;  %p493_p8 = scmp.lt.s32.totalorder %s165_s19, %s491_s3 }
  0x42   : > { %p488_p9 = pnand %p486_p2, %p442_p5  ;;  %p494_p7 = scmp.lt.s32.totalorder %s492_s8, %s485_s25 }
  0x44   : > { %p489_p11 = pneg %p488_p9  ;;  %p495_p3 = por %p494_p7, %p493_p8 }
  0x46   : > { %p496_p6 = pnand %p495_p3, %p489_p11 }
  0x48   : > { %499 = shalt.err (!%p496_p6)
}
  0x49   : > { %382 = dma.hbm_to_vmem [thread:$0]  (!%p688_p0), %s733_s16, 128, %s165_s19, %s153_s30  }
  0x4a   : > { %p839_p13 = scmp.ne.s32.totalorder %s838_s7, 0 }
  0x4b   : > { %s760_s15 = sand.u32 (!%p839_p13), 1, %s570_s10   ;;  %p840_p5 = scmp.ne.s32.totalorder (!%p839_p13), %s832_s21, 0 }
  0x4c   : > { %173 = sbr.rel (%p839_p13) target bundleno = 122 (0x7a), region = 28  ;;  %s363_s18 = sshll.u32 (!%p839_p13), %s760_s15, 3 }
  0x4d   : > { %s176_s4 = scalar_lea.sflag (!%p839_p13), [#allocation3], %s760_s15  ;;  %s179_s6 = scalar_lea.vmem (!%p839_p13), [#allocation2], %s363_s18 }
  0x53   : > { %553 = dma.done.wait (%p840_p5), %s176_s4, 128  }
  0x54   : > { %555 = vsyncadd (%p840_p5), %s176_s4, 4294967168  ;;  %s185_s5 = scalar_lea.sflag [#allocation6], %s760_s15  ;;  %s188_s16 = scalar_lea.vmem [#allocation5], %s363_s18 }
  0x55   : > { %557 = dma.done.wait (%p840_p5), %s185_s5, 128  }
  0x56   : > { %559 = vsyncadd (%p840_p5), %s185_s5, 4294967168  ;;  %v221_v0 = vld [vmem:[%s179_s6] sm:$0xff]  ;;  %v222_v1 = vld [vmem:[%s188_s16] sm:$0xff]  ;;  %s367_s7 = sshll.u32 %s578_s12, 7  ;;  %s213_s19 = scalar_lea.vmem [#allocation7], %s363_s18 }
  0x57   : > { %v223_v2 = vsub.f32 %v221_v0, %v222_v1  ;;  %s251_s30 = sshll.u32 %s213_s19, 4  ;;  %s777_s27 = scalar_lea.hbm %s828_s2, %s367_s7  ;;  %s779_s30 = int_to_ptr.vmem [resolvable:$true] %s251_s30 }
  0x58   : > { %s238_s28 = scalar_lea.sflag [#allocation4], %s760_s15  ;;  %s500_s29 = scalar_lea.vmem %s779_s30, 128 }
  0x59   : > { %v224_v3 = vmul.f32 %v223_v2, %v223_v2  ;;  %p501_p8 = scmp.ne.s32.totalorder %s779_s30, %s500_s29  ;;  %p841_p0 = scmp.ne.s32.totalorder %s833_s22, 0 }
  0x5a   : > { %s590_s12 = smov [#allocation7]  }
  0x5b   : > { %v225_v4 = vadd.f32 1e-06, %v224_v3  ;;  %p502_p7 = pnand %p501_p8, %p841_p0  ;;  %s504_s25 = sshll.u32 %s590_s12, 4  ;;  %s505_s25 = int_to_ptr.vmem [resolvable:$false] %s504_s25 }
  0x5c   : > { %s506_s26 = scalar_lea.vmem %s505_s25, 256  ;;  %p507_p10 = scmp.lt.s32.totalorder %s779_s30, %s505_s25 }
  0x5d   : > { %438 = vrsqrt.f32 %v225_v4  ;;  %vm228_vm0 = vcmp.eq.f32.partialorder %v225_v4, inf  ;;  %v231_v6 = vand.u32 2147483648, %v225_v4  ;;  %vm230_vm1 = vcmp.eq.f32.partialorder %v225_v4, 0.0  ;;  %p503_p4 = pneg %p502_p7  ;;  %p508_p12 = scmp.lt.s32.totalorder %s506_s26, %s500_s29 }
  0x5f   : > { %p509_p1 = por %p508_p12, %p507_p10 }
  0x61   : > { %p510_p2 = pnand %p509_p1, %p503_p4 }
  0x67   : > { %v439_v5 = vpop.eup %438 }
  0x68   : > { %v227_v7 = vmul.f32 %v439_v5, %v225_v4 }
  0x6a   : > { %v229_v8 = vsel %vm228_vm0, %v225_v4, %v227_v7 }
  0x6b   : > { %v232_v9 = vsel %vm230_vm1, %v231_v6, %v229_v8 }
  0x6c   : > { %236 = vst [vmem:[%s213_s19] sm:$0xff] %v232_v9 }
  0x6d   : > { %513 = shalt.err (!%p510_p2)
}
  0x6e   : > { %s514_s3 = scalar_lea.hbm %s777_s27, 128  ;;  %s518_s18 = scalar_lea.hbm %s828_s2, 256 }
  0x6f   : > { %p515_p9 = scmp.ne.s32.totalorder %s777_s27, %s514_s3  ;;  %p519_p6 = scmp.lt.u32.totalorder %s777_s27, %s828_s2 }
  0x70   : > { %p520_p13 = scmp.lt.u32.totalorder %s518_s18, %s514_s3  ;;  %p522_p8 = scmp.lt.u32.totalorder %s514_s3, %s777_s27 }
  0x71   : > { %p516_p11 = pnand %p515_p9, %p841_p0 }
  0x72   : > { %p521_p5 = por %p520_p13, %p519_p6 }
  0x73   : > { %p517_p3 = pneg %p516_p11 }
  0x74   : > { %p523_p7 = por %p522_p8, %p521_p5 }
  0x76   : > { %p524_p4 = pnand %p523_p7, %p517_p3 }
  0x78   : > { %527 = shalt.err (!%p524_p4)
}
  0x79   : > { %374 = dma.vmem_to_hbm [thread:$0]  (%p841_p0), %s779_s30, 128, %s777_s27, %s238_s28  }
  0x7a PF: > { %s263_s5 = sand.u32 1, %s566_s9   ;;  %p842_p10 = scmp.ne.s32.totalorder %s834_s24, 0 }
  0x7b   : > { %p843_p12 = scmp.ge.s32.totalorder %s586_s14, 2  ;;  %s264_s16 = scalar_lea.sflag [#allocation4], %s263_s5 }
  0x7d   : > { %p384_p1 = pnand %p843_p12, %p842_p10 }
  0x7f   : > { %561 = dma.done.wait (!%p384_p1), %s264_s16, 128  }
  0x80   : > { %563 = vsyncadd (!%p384_p1), %s264_s16, 4294967168  ;;  %s21_s14 = sadd.s32 1, %s586_s14   ;;  %s844_s9 = smov %s570_s10 }
  0x81   : > { %p18_p2 = scmp.ge.s32.totalorder %s21_s14, 4   ;;  %s845_s10 = smov %s574_s11 }
  0x82   : > { %s846_s11 = smov %s662_s23  ;;  %s847_s12 = smov %s582_s13 }
  0x83   : > { %s848_s13 = smov %s850_s17  ;;  %20 = sbr.rel (!%p18_p2) target bundleno = 8 (0x8), region = 90 }
  0x8a   :  { %269 = vsyncpa [#allocation3], 1 }
  0x8b   :  { %271 = vsyncpa [#allocation3 + $0x1], 1 }
  0x8c   :  { %272 = vsyncpa [#allocation6], 1 }
  0x8d   :  { %274 = vsyncpa [#allocation6 + $0x1], 1 }
  0x8e   :  { %275 = vsyncpa [#allocation4], 1 }
  0x8f   :  { %277 = vsyncpa [#allocation4 + $0x1], 1 }

</bundles_post_ra>
